<compile_context>
chip_gen: v7x
topology: tpu7x:2x2x1
jax: 0.10.0
libtpu: 0.0.40
codegen_flags: <defaults>
</compile_context>

<pallas_src>
import functools
import math

import jax
import jax.numpy as jnp
from jax.experimental import pallas as pl
from jax.experimental.pallas import tpu as pltpu

_BLOCK_BUDGET_BYTES = 2 * 1024 * 1024  # per input block (Pallas double-buffers it)


# --------------------------------------------------------------------------- #
# Kernels
# --------------------------------------------------------------------------- #
def _middle_single_kernel(x_ref, o_ref, *, acc_dtype):
    """Whole reduction in one step: (TP, K, TQ) -> (TP, TQ)."""
    x = x_ref[...].astype(acc_dtype)
    o_ref[...] = (jnp.sum(x, axis=1) * 2).astype(o_ref.dtype)


def _middle_multi_kernel(x_ref, o_ref, acc_ref):
    """Accumulating reduction of the middle (sublane) axis of (TP, TK, TQ) blocks."""
    k = pl.program_id(2)

    @pl.when(k == 0)
    def _init():
        acc_ref[...] = jnp.zeros_like(acc_ref)

    acc_ref[...] += jnp.sum(x_ref[...].astype(acc_ref.dtype), axis=1)

    @pl.when(k == pl.num_programs(2) - 1)
    def _finalize():
        # a + a folded into a post-reduction scale.
        o_ref[...] = (acc_ref[...] * 2).astype(o_ref.dtype)


def _last_single_kernel(x_ref, o_ref, *, acc_dtype):
    """Whole reduction in one step: (TM, K) -> (TM, 1)."""
    x = x_ref[...].astype(acc_dtype)
    o_ref[...] = (jnp.sum(x, axis=-1, keepdims=True) * 2).astype(o_ref.dtype)


def _last_multi_kernel(x_ref, o_ref, acc_ref):
    """Accumulating reduction of the last (lane) axis of (TM, TK) blocks."""
    k = pl.program_id(1)

    @pl.when(k == 0)
    def _init():
        acc_ref[...] = jnp.zeros_like(acc_ref)

    acc_ref[...] += jnp.sum(x_ref[...].astype(acc_ref.dtype), axis=-1, keepdims=True)

    @pl.when(k == pl.num_programs(1) - 1)
    def _finalize():
        o_ref[...] = (acc_ref[...] * 2).astype(o_ref.dtype)


# --------------------------------------------------------------------------- #
# Tile selection (sized against a per-block budget -> safe on v5e/v6e/v7x)
# --------------------------------------------------------------------------- #
def _pick_middle_tiles(P, K, Q, itemsize, budget):
    # Lane tile: full Q when small, else a 128-multiple (lane-dense output slab).
    TQ = Q if Q <= 512 else 512
    TP = P if P <= 8 else 8
    # Reduction tile must evenly divide K (no padded sublanes summed in) and be a
    # multiple of 8 unless it equals all of K.
    if TP * K * TQ * itemsize <= budget:
        TK = K
    else:
        max_tk = max(8, (budget // max(1, TP * TQ * itemsize)) // 8 * 8)
        TK = None
        t = min(max_tk, (K // 8) * 8)
        while t >= 8:
            if K % t == 0:
                TK = t
                break
            t -= 8
        if TK is None:
            TK = K  # no clean divisor: correctness over footprint
    # Grow TP toward the budget for better pipelining when P is large.
    while TP * 2 <= P and TP * 2 <= 1024 and TP * 2 * TK * TQ * itemsize <= budget:
        TP *= 2
    return TP, TK, TQ


def _pick_last_tiles(M, K, itemsize, budget):
    TM = M if M <= 8 else 8
    # Reduction tile must evenly divide K and be a multiple of 128 unless it is K.
    if TM * K * itemsize <= budget or K <= 128:
        TK = K
    else:
        max_tk = max(128, (budget // max(1, TM * itemsize)) // 128 * 128)
        TK = None
        t = min(max_tk, (K // 128) * 128)
        while t >= 128:
            if K % t == 0:
                TK = t
                break
            t -= 128
        if TK is None:
            TK = K
    while TM * 2 <= M and TM * 2 <= 4096 and TM * 2 * TK * itemsize <= budget:
        TM *= 2
    return TM, TK


# --------------------------------------------------------------------------- #
# Wrapper (same semantics as KeepdimSumModule.forward)
# --------------------------------------------------------------------------- #
def keepdim_sum(a, axis, keepdim, dtype=None, block_budget_bytes=_BLOCK_BUDGET_BYTES):
    ndim = a.ndim
    axis = axis % ndim
    shape = a.shape

    # TODO(synk): torch.sum promotes integer/bool inputs to int64 when dtype is None;
    # with JAX x64 disabled we keep the input dtype for integer inputs instead.
    out_dtype = jnp.dtype(dtype) if dtype is not None else jnp.dtype(a.dtype)
    acc_dtype = jnp.float32 if jnp.issubdtype(out_dtype, jnp.floating) else jnp.int32

    itemsize = jnp.dtype(a.dtype).itemsize
    lead_shape = shape[:axis] + shape[axis + 1:]
    K = shape[axis]

    if axis == ndim - 1:
        # Lane-axis reduction: (M, K) slab, reduce K on lanes.
        M = int(math.prod(shape[:-1]))
        a2d = a.reshape(M, K)
        TM, TK = _pick_last_tiles(M, K, itemsize, block_budget_bytes)
        k_steps = pl.cdiv(K, TK)
        if k_steps == 1:
            out2d = pl.pallas_call(
                functools.partial(_last_single_kernel, acc_dtype=acc_dtype),
                out_shape=jax.ShapeDtypeStruct((M, 1), out_dtype),
                grid=(pl.cdiv(M, TM),),
                in_specs=[pl.BlockSpec((TM, K), lambda m: (m, 0))],
                out_specs=pl.BlockSpec((TM, 1), lambda m: (m, 0)),
                compiler_params=pltpu.CompilerParams(
                    dimension_semantics=("parallel",)),
            )(a2d)
        else:
            out2d = pl.pallas_call(
                _last_multi_kernel,
                out_shape=jax.ShapeDtypeStruct((M, 1), out_dtype),
                grid=(pl.cdiv(M, TM), k_steps),
                in_specs=[pl.BlockSpec((TM, TK), lambda m, k: (m, k))],
                out_specs=pl.BlockSpec((TM, 1), lambda m, k: (m, 0)),
                scratch_shapes=[pltpu.VMEM((TM, 1), acc_dtype)],
                compiler_params=pltpu.CompilerParams(
                    dimension_semantics=("parallel", "arbitrary")),
            )(a2d)
        out = out2d.reshape(lead_shape)
    else:
        # Sublane-axis reduction, no transpose: (P, K, Q), reduce the middle axis;
        # lanes stay on the trailing (non-reduced) dims -> lane-dense loads and a
        # lane-dense (P, Q) output slab.
        P = int(math.prod(shape[:axis]))
        Q = int(math.prod(shape[axis + 1:]))
        a3d = a.reshape(P, K, Q)
        TP, TK, TQ = _pick_middle_tiles(P, K, Q, itemsize, block_budget_bytes)
        k_steps = pl.cdiv(K, TK)
        if k_steps == 1:
            out2d = pl.pallas_call(
                functools.partial(_middle_single_kernel, acc_dtype=acc_dtype),
                out_shape=jax.ShapeDtypeStruct((P, Q), out_dtype),
                grid=(pl.cdiv(P, TP), pl.cdiv(Q, TQ)),
                in_specs=[pl.BlockSpec((TP, K, TQ), lambda p, q: (p, 0, q))],
                out_specs=pl.BlockSpec((TP, TQ), lambda p, q: (p, q)),
                compiler_params=pltpu.CompilerParams(
                    dimension_semantics=("parallel", "parallel")),
            )(a3d)
        else:
            out2d = pl.pallas_call(
                _middle_multi_kernel,
                out_shape=jax.ShapeDtypeStruct((P, Q), out_dtype),
                grid=(pl.cdiv(P, TP), pl.cdiv(Q, TQ), k_steps),
                in_specs=[pl.BlockSpec((TP, TK, TQ), lambda p, q, k: (p, k, q))],
                out_specs=pl.BlockSpec((TP, TQ), lambda p, q, k: (p, q)),
                scratch_shapes=[pltpu.VMEM((TP, TQ), acc_dtype)],
                compiler_params=pltpu.CompilerParams(
                    dimension_semantics=("parallel", "parallel", "arbitrary")),
            )(a3d)
        out = out2d.reshape(lead_shape)

    if keepdim:
        out = jnp.expand_dims(out, axis)
    return out


# --------------------------------------------------------------------------- #
# Main
# --------------------------------------------------------------------------- #
if __name__ == "__main__":
    key = jax.random.PRNGKey(0)
    k0, k1 = jax.random.split(key)

    # Small NCHW input, consistent with the test module's tensor inputs.
    x = jax.random.normal(k0, (2, 4, 16, 16), dtype=jnp.float32)

    # (axis, keepdim, dtype, budget) configs:
    #  * primary KeepdimSumModule(1, True) case (single-step sublane kernel),
    #  * last-axis and leading-axis cases,
    #  * a tiny-budget case to exercise the multi-step accumulator kernel.
    configs = [
        (1, True, None, _BLOCK_BUDGET_BYTES),
        (3, False, None, _BLOCK_BUDGET_BYTES),
        (0, True, None, _BLOCK_BUDGET_BYTES),
        (2, True, None, 4096),          # forces the multi-step middle-axis path
    ]
    for axis, keepdim, dtype, budget in configs:
        out = keepdim_sum(x, axis=axis, keepdim=keepdim, dtype=dtype,
                          block_budget_bytes=budget)
        out = jax.block_until_ready(out)
        ref = jnp.sum(x + x, axis=axis, keepdims=keepdim, dtype=dtype)
        assert out.shape == ref.shape, (axis, out.shape, ref.shape)
        assert out.dtype == ref.dtype, (axis, out.dtype, ref.dtype)
        assert jnp.allclose(out, ref, atol=1e-5, rtol=1e-5), axis

    # Small 2-D input that exercises the multi-step lane-axis (last-dim) kernel.
    y = jax.random.normal(k1, (8, 256), dtype=jnp.float32)
    out = jax.block_until_ready(
        keepdim_sum(y, axis=1, keepdim=False, block_budget_bytes=4096))
    ref = jnp.sum(y + y, axis=1, keepdims=False)
    assert out.shape == ref.shape and out.dtype == ref.dtype
    assert jnp.allclose(out, ref, atol=1e-5, rtol=1e-5)

    print("KERNEL_OK")
</pallas_src>

<mosaic_0001>
module attributes {stable_mosaic.version = 11 : i64} {
  func.func @_middle_single_kernel(%arg0: i32, %arg1: i32, %arg2: memref<2x4x256xf32, #tpu.memory_space<vmem>>, %arg3: memref<2x256xf32, #tpu.memory_space<vmem>>) attributes {dimension_semantics = [#tpu.dimension_semantics<parallel>, #tpu.dimension_semantics<parallel>], iteration_bounds = array<i64: 1, 1>, scalar_prefetch = 0 : i64, scratch_operands = 0 : i64, tpu.core_type = #tpu.core_type<tc>, window_params = [{transform_indices = @transform_0, window_bounds = array<i64: 2, 4, 256>}, {transform_indices = @transform_1, window_bounds = array<i64: 2, 256>}]} {
    %c0 = arith.constant 0 : index
    %c0_0 = arith.constant 0 : index
    %c0_1 = arith.constant 0 : index
    %0 = vector.load %arg2[%c0, %c0_0, %c0_1] : memref<2x4x256xf32, #tpu.memory_space<vmem>>, vector<2x4x256xf32>
    %cst = arith.constant dense<0.000000e+00> : vector<2x256xf32>
    %1 = vector.multi_reduction <add>, %0, %cst [1] : vector<2x4x256xf32> to vector<2x256xf32>
    %cst_2 = arith.constant 2.000000e+00 : f32
    %2 = vector.broadcast %cst_2 : f32 to vector<2x256xf32>
    %3 = arith.mulf %1, %2 : vector<2x256xf32>
    %c0_3 = arith.constant 0 : index
    %c0_4 = arith.constant 0 : index
    %4 = vector.load %arg3[%c0_3, %c0_4] : memref<2x256xf32, #tpu.memory_space<vmem>>, vector<2x256xf32>
    tpu.vector_store %arg3[%c0_3, %c0_4], %3 {strides = array<i32>} : memref<2x256xf32, #tpu.memory_space<vmem>>, vector<2x256xf32>,
    return
  }
  func.func @transform_0(%arg0: i32, %arg1: i32) -> (i32, i32, i32) {
    %c0_i32 = arith.constant 0 : i32
    %c0_i32_0 = arith.constant 0 : i32
    return %arg0, %c0_i32, %arg1 : i32, i32, i32
  }
  func.func @transform_1(%arg0: i32, %arg1: i32) -> (i32, i32) {
    %c0_i32 = arith.constant 0 : i32
    return %arg0, %arg1 : i32, i32
  }
}

</mosaic_0001>

<bundles_post_ra>
// kernel: tpu_custom_call.1
= control target key start
LH: loop header
LB: loop body
LE: loop exit
PB: predicated region body
PF: predicated region fallthrough
CT: control target
= control target key end

     0   :  { %6 = vsyncpa [#allocation3], 0  ;;  %s208_s0 = inlined_call_operand.hbm [shape: f32[2,4,256], index: 0, kind: input, shape index: {}]   ;;  %s209_s1 = inlined_call_operand.hbm [shape: f32[2,256], index: 1, kind: output, shape index: {}]  }
   0x1   :  { %7 = vsyncpa [#allocation4], 0  ;;  %s169_s6 = smov [#allocation2]   ;;  %s121_s10 = scalar_lea.hbm %s208_s0, 256 }
   0x2   :  { %s13_s7 = sshll.u32 %s169_s6, 4  ;;  %p122_p0 = scmp.ne.s32.totalorder %s208_s0, %s121_s10  ;;  %s14_s7 = int_to_ptr.vmem [resolvable:$true] %s13_s7 }
   0x3   :  { %p125_p1 = scmp.lt.u32.totalorder %s121_s10, %s208_s0 }
   0x5   :  { %p127_p2 = pnand %p125_p1, %p122_p0 }
   0x7   :  { %130 = shalt.err (!%p127_p2)
}
   0x8   :  { %s131_s15 = scalar_lea.vmem %s14_s7, 256  ;;  %p136_p4 = scmp.lt.s32.totalorder %s14_s7, %s14_s7 }
   0x9   :  { %p132_p3 = scmp.ne.s32.totalorder %s14_s7, %s131_s15  ;;  %p137_p5 = scmp.lt.s32.totalorder %s131_s15, %s131_s15 }
   0xb   :  { %p138_p6 = por %p137_p5, %p136_p4 }
   0xd   :  { %p139_p7 = pnand %p138_p6, %p132_p3 }
   0xf   :  { %142 = shalt.err (!%p139_p7)
}
  0x10   :  { %s170_s16 = smov 128   ;;  %s171_s17 = smov 8  }
  0x11   :  { %19 = dma.hbm_to_vmem [thread:$0]  %s208_s0, 256, %s14_s7, [#allocation3], %s170_s16, %s170_s16, %s171_s17  }
  0x12   :  { %165 = dma.done.wait [#allocation3], 256  }
  0x13   :  { %166 = vsyncadd [#allocation3], 4294967040  ;;  %vm31_vm0 = vcmask 1043456   ;;  %v23_v0 = vld [vmem:[#allocation2] sm:$0xff]  ;;  %v24_v1 = vld [vmem:[#allocation2 + $0x8] sm:$0xff]  ;;  %v72_v20 = vlaneseq  ;;  %vm89_vm1 = vcmask 1041409  }
  0x14   :  { %v27_v2 = vcombine.high %v23_v0, %v23_v0  ;;  %v28_v3 = vcombine.high %v24_v1, %v24_v1  ;;  %v32_v4 = vsel %vm31_vm0, %v23_v0, 0.0  ;;  %v46_v5 = vsel %vm31_vm0, %v24_v1, 0.0  ;;  %s173_s0 = smov [#allocation5]  }
  0x15   :  { %v33_v6 = vrot.slane %v32_v4, 4  ;;  %v47_v7 = vrot.slane %v46_v5, 4  ;;  %v172_v18 = vmov 1983009808   ;;  %v73_v30 = vshrl.u32 %v72_v20, 7  ;;  %s105_s20 = sshll.u32 %s173_s0, 4  ;;  %s106_s20 = int_to_ptr.vmem [resolvable:$true] %s105_s20 }
  0x16   :  { %v39_v8 = vsel %vm31_vm0, %v27_v2, 0.0  ;;  %v53_v9 = vsel %vm31_vm0, %v28_v3, 0.0  ;;  %v70_v19 = vunpack.c.l.s4 %v172_v18  ;;  %vm91_vm2 = vcmask 1043459   ;;  %s143_s21 = scalar_lea.vmem %s106_s20, 64  ;;  %p148_p9 = scmp.lt.s32.totalorder %s106_s20, %s106_s20 }
  0x17   :  { %v34_v10 = vadd.f32 %v33_v6, %v32_v4  ;;  %v40_v11 = vrot.slane %v39_v8, 4  ;;  %v48_v12 = vadd.f32 %v47_v7, %v46_v5  ;;  %v54_v13 = vrot.slane %v53_v9, 4  ;;  %p144_p8 = scmp.ne.s32.totalorder %s106_s20, %s143_s21  ;;  %p149_p10 = scmp.lt.s32.totalorder %s143_s21, %s143_s21 }
  0x18   :  { %v71_v29 = vunpack.c.0.s8 %v70_v19  ;;  %vm93_vm3 = vcmask 1045509   ;;  %vm95_vm4 = vcmask 1047559  }
  0x19   :  { %v35_v14 = vrot.slane %v34_v10, 2  ;;  %v41_v15 = vadd.f32 %v40_v11, %v39_v8  ;;  %v49_v16 = vrot.slane %v48_v12, 2  ;;  %v55_v17 = vadd.f32 %v54_v13, %v53_v9  ;;  %p150_p11 = por %p149_p10, %p148_p9 }
  0x1a   :  { %v74_v41 = vsub.s32 %v71_v29, %v73_v30 }
  0x1b   :  { %v36_v21 = vadd.f32 %v35_v14, %v34_v10  ;;  %v42_v22 = vrot.slane %v41_v15, 2  ;;  %v50_v23 = vadd.f32 %v49_v16, %v48_v12  ;;  %v56_v24 = vrot.slane %v55_v17, 2  ;;  %p151_p12 = pnand %p150_p11, %p144_p8 }
  0x1d   :  { %v37_v25 = vrot.slane %v36_v21, 1  ;;  %v43_v26 = vadd.f32 %v42_v22, %v41_v15  ;;  %v51_v27 = vrot.slane %v50_v23, 1  ;;  %v57_v28 = vadd.f32 %v56_v24, %v55_v17 }
  0x1f   :  { %v38_v31 = vadd.f32 %v37_v25, %v36_v21  ;;  %v44_v32 = vrot.slane %v43_v26, 1  ;;  %v52_v33 = vadd.f32 %v51_v27, %v50_v23  ;;  %v58_v34 = vrot.slane %v57_v28, 1 }
  0x21   :  { %v45_v35 = vadd.f32 %v44_v32, %v43_v26  ;;  %v59_v36 = vadd.f32 %v58_v34, %v57_v28  ;;  %v60_v37 = vmul.f32 2.0, %v38_v31  ;;  %v62_v38 = vmul.f32 2.0, %v52_v33 }
  0x23   :  { %v61_v39 = vmul.f32 2.0, %v45_v35  ;;  %v63_v40 = vmul.f32 2.0, %v59_v36 }
  0x25   :  { %v68_v42 = vcombine.low %v60_v37, %v61_v39  ;;  %v76_v43 = vcombine.low %v62_v38, %v63_v40 }
  0x27   :  { %v75_v44 = vrot.slane %v68_v42, %v74_v41  ;;  %v83_v45 = vrot.slane %v76_v43, %v74_v41 }
  0x29   :  { %v88_v46 = vrot.slane %v83_v45, 7 }
  0x2b   :  { %v90_v47 = vsel %vm89_vm1, %v88_v46, %v75_v44 }
  0x2c   :  { %v92_v48 = vsel %vm91_vm2, %v88_v46, %v90_v47 }
  0x2d   :  { %v94_v49 = vsel %vm93_vm3, %v88_v46, %v92_v48 }
  0x2e   :  { %v96_v50 = vsel %vm95_vm4, %v88_v46, %v94_v49 }
  0x2f   :  { %98 = vst [vmem:[#allocation5] sm:$0xf] %v96_v50 }
  0x30   :  { %154 = shalt.err (!%p151_p12)
}
  0x31   :  { %s155_s24 = scalar_lea.hbm %s209_s1, 64 }
  0x32   :  { %p156_p13 = scmp.ne.s32.totalorder %s209_s1, %s155_s24  ;;  %p159_p0 = scmp.lt.u32.totalorder %s155_s24, %s209_s1 }
  0x34   :  { %p161_p1 = pnand %p159_p0, %p156_p13 }
  0x36   :  { %164 = shalt.err (!%p161_p1)
}
  0x37   :  { %108 = dma.vmem_to_hbm [thread:$0]  %s106_s20, 64, %s209_s1, [#allocation4]  }
  0x38   :  { %167 = dma.done.wait [#allocation4], 64  }
  0x39   :  { %168 = vsyncadd [#allocation4], 4294967232 }
  0x3a   :  { %112 = vsyncpa [#allocation3], 1 }
  0x3b   :  { %113 = vsyncpa [#allocation4], 1 }

</bundles_post_ra>
